<compile_context>
chip_gen: v6e
topology: v6e:2x2x1
jax: 0.10.0
libtpu: 0.0.40
codegen_flags: <defaults>
</compile_context>

<pallas_src>
import functools

import jax
import jax.numpy as jnp
from jax import lax
from jax.experimental import pallas as pl
from jax.experimental.pallas import tpu as pltpu

BN_EPS = 1e-5
# MXU input dtype for the three matmuls (accumulation is always f32).
MATMUL_DTYPE = jnp.bfloat16


def _round_up(n, m):
    return -(-n // m) * m


def _bn_train(h, gamma, beta, valid_mask, n_valid):
    """BatchNorm1d, training mode, single pass: masked sum / sum-of-squares,
    then h*scale + shift.  `valid_mask` (or None) masks zero-padded batch rows
    out of the statistics."""
    inv_n = 1.0 / float(n_valid)
    hm = h if valid_mask is None else h * valid_mask
    s1 = jnp.sum(hm, axis=0, keepdims=True)
    s2 = jnp.sum(hm * hm, axis=0, keepdims=True)
    mean = s1 * inv_n
    var = jnp.maximum(s2 * inv_n - mean * mean, 0.0)   # biased batch variance
    scale = gamma * lax.rsqrt(var + BN_EPS)
    shift = beta - mean * scale
    return h * scale + shift


def _mm(x, w):
    """(M,K) @ (K,N): bf16 MXU inputs, f32 accumulation.  `w` is already in
    the lane-dense, lane-padded (K, N) layout prepared once at init."""
    return lax.dot_general(
        x.astype(MATMUL_DTYPE), w,
        dimension_numbers=(((1,), (0,)), ((), ())),
        preferred_element_type=jnp.float32)


def base_model_kernel(
    x_ref,                  # (Bp, num_inputs)  f32
    w1_ref,                 # (num_inputs, HP)  bf16
    w2_ref,                 # (HP, HP)          bf16
    w3_ref,                 # (HP, OUT_PAD)     bf16
    vec_ref,                # (8, VEC_PAD)      f32  rows: b1,g1,be1,b2,g2,be2,b3,0
    o_ref,                  # (Bp, OUT_PAD)     f32
    *, n_valid,
):
    bp = x_ref.shape[0]
    hp = w1_ref.shape[1]
    out_pad = o_ref.shape[1]

    if n_valid == bp:
        mask = None                       # no batch padding -> no masking cost
    else:
        rows = lax.broadcasted_iota(jnp.int32, (bp, 1), 0)
        mask = (rows < n_valid).astype(jnp.float32)

    # Single DMA of all per-feature vectors, sliced here (lane-aligned slices).
    vecs = vec_ref[...]
    b1, g1, be1 = vecs[0:1, :hp], vecs[1:2, :hp], vecs[2:3, :hp]
    b2, g2, be2 = vecs[3:4, :hp], vecs[4:5, :hp], vecs[5:6, :hp]
    b3 = vecs[6:7, :out_pad]

    # --- LinearLayer 1: Linear -> ReLU -> BatchNorm1d ---
    # x cast to bf16 in-kernel (free VPU work; keeps x's HBM traffic at 4B/elem once)
    h = _mm(x_ref[...], w1_ref[...]) + b1
    h = jnp.maximum(h, 0.0)
    h = _bn_train(h, g1, be1, mask, n_valid)

    # --- LinearLayer 2: Linear -> ReLU -> BatchNorm1d ---
    h = _mm(h, w2_ref[...]) + b2
    h = jnp.maximum(h, 0.0)
    h = _bn_train(h, g2, be2, mask, n_valid)

    # --- Output Linear (lane-padded columns -> full-128-lane store) ---
    o_ref[...] = _mm(h, w3_ref[...]) + b3


def prepare_params(params):
    """ONE-TIME preprocessing of PyTorch-layout params: transpose weights to
    (K, N), lane-pad N to a multiple of 128, cast to MATMUL_DTYPE, and pack the
    seven per-feature f32 vectors into a single (8, VEC_PAD) array.
    Padded columns use zero weights / zero gamma / zero beta, so they stay
    exactly zero through ReLU and BN and contribute nothing downstream."""
    md = MATMUL_DTYPE
    num_inputs = params["w1"].shape[1]
    hidden = params["w1"].shape[0]
    num_outputs = params["w3"].shape[0]

    hp = _round_up(hidden, 128)
    out_pad = _round_up(num_outputs, 128)
    vec_pad = max(hp, out_pad)

    def pad_w(w_t, rows, cols):          # w_t: (K, N) f32
        return jnp.pad(
            w_t, ((0, rows - w_t.shape[0]), (0, cols - w_t.shape[1]))
        ).astype(md)

    w1p = pad_w(params["w1"].T, num_inputs, hp)     # (num_inputs, HP)
    w2p = pad_w(params["w2"].T, hp, hp)             # (HP, HP)
    w3p = pad_w(params["w3"].T, hp, out_pad)        # (HP, OUT_PAD)

    def pad_vec(v, width):
        v = v.reshape(-1).astype(jnp.float32)
        return jnp.pad(v, (0, width - v.shape[0]))

    vecs = jnp.stack([
        pad_vec(params["b1"], vec_pad), pad_vec(params["g1"], vec_pad),
        pad_vec(params["be1"], vec_pad),
        pad_vec(params["b2"], vec_pad), pad_vec(params["g2"], vec_pad),
        pad_vec(params["be2"], vec_pad),
        pad_vec(params["b3"], vec_pad),
        jnp.zeros((vec_pad,), jnp.float32),
    ], axis=0)                                       # (8, VEC_PAD)

    return {"w1": w1p, "w2": w2p, "w3": w3p, "vecs": vecs,
            "num_outputs": num_outputs, "out_pad": out_pad}


def base_model_forward(x, prepared):
    """x: (B, C, H, W) float32.  `prepared`: output of prepare_params (cached)."""
    B = x.shape[0]
    x_flat = x.reshape(B, -1).astype(jnp.float32)    # Flatten == torch x.view(B, -1)

    # Sublane-pad the batch: bf16 vregs pack [16,128], f32 pack [8,128].
    sub = 16 if MATMUL_DTYPE == jnp.bfloat16 else 8
    Bp = _round_up(B, sub)
    if Bp != B:
        x_flat = jnp.pad(x_flat, ((0, Bp - B), (0, 0)))

    out_pad = prepared["out_pad"]
    inputs = (x_flat, prepared["w1"], prepared["w2"], prepared["w3"],
              prepared["vecs"])

    def full_block(a):
        # One grid point: each operand is a single full-array VMEM block.
        return pl.BlockSpec(a.shape, lambda: (0,) * a.ndim)

    out_full = pl.pallas_call(
        functools.partial(base_model_kernel, n_valid=B),
        out_shape=jax.ShapeDtypeStruct((Bp, out_pad), jnp.float32),
        grid=(),
        in_specs=[full_block(a) for a in inputs],
        out_specs=pl.BlockSpec((Bp, out_pad), lambda: (0, 0)),
        compiler_params=pltpu.CompilerParams(vmem_limit_bytes=32 * 1024 * 1024),
    )(*inputs)

    return out_full[:B, :prepared["num_outputs"]]


def init_params(key, num_inputs, num_hidden, num_outputs):
    """Deterministic init mimicking nn.Linear defaults (U(-1/sqrt(fan_in), +)),
    BatchNorm1d defaults (gamma=1, beta=0).  PyTorch (out, in) weight layout."""
    k1, k2, k3, k4, k5, k6 = jax.random.split(key, 6)

    def lin(kw, kb, fan_in, fan_out):
        bound = 1.0 / float(fan_in) ** 0.5
        w = jax.random.uniform(kw, (fan_out, fan_in), jnp.float32, -bound, bound)
        b = jax.random.uniform(kb, (1, fan_out), jnp.float32, -bound, bound)
        return w, b

    w1, b1 = lin(k1, k2, num_inputs, num_hidden)
    w2, b2 = lin(k3, k4, num_hidden, num_hidden)
    w3, b3 = lin(k5, k6, num_hidden, num_outputs)
    return {
        "w1": w1, "b1": b1,
        "g1": jnp.ones((1, num_hidden), jnp.float32),
        "be1": jnp.zeros((1, num_hidden), jnp.float32),
        "w2": w2, "b2": b2,
        "g2": jnp.ones((1, num_hidden), jnp.float32),
        "be2": jnp.zeros((1, num_hidden), jnp.float32),
        "w3": w3, "b3": b3,
    }


def reference_forward(x, params):
    """Pure-JAX reference mirroring the forward (training-mode BN), using the
    same bf16-input / f32-accumulate matmul path as the kernel."""
    B = x.shape[0]
    h = x.reshape(B, -1)

    def lin(h, w, b):
        return lax.dot_general(
            h.astype(MATMUL_DTYPE), w.astype(MATMUL_DTYPE),
            dimension_numbers=(((1,), (1,)), ((), ())),
            preferred_element_type=jnp.float32) + b

    h = jnp.maximum(lin(h, params["w1"], params["b1"]), 0.0)
    h = _bn_train(h, params["g1"], params["be1"], None, B)
    h = jnp.maximum(lin(h, params["w2"], params["b2"]), 0.0)
    h = _bn_train(h, params["g2"], params["be2"], None, B)
    return lin(h, params["w3"], params["b3"])


# TODO(synk): nn.BatchNorm1d running_mean/running_var buffer updates are a
# training-time side effect and do not affect this forward output; omitted.

if __name__ == "__main__":
    B, C, H, W = 8, 4, 16, 16            # small demo shapes
    num_inputs = C * H * W               # 1024
    num_hidden = 32
    num_outputs = 8

    key = jax.random.PRNGKey(0)
    kx, kp = jax.random.split(key)
    x = jax.random.normal(kx, (B, C, H, W), jnp.float32)
    params = init_params(kp, num_inputs, num_hidden, num_outputs)
    prepared = prepare_params(params)     # one-time weight prep (cache & reuse)

    out = base_model_forward(x, prepared)
    out = jax.block_until_ready(out)
    ref = reference_forward(x, params)
    assert out.shape == (B, num_outputs)
    assert jnp.allclose(out, ref, atol=1e-3, rtol=1e-3), "mismatch vs JAX reference"

    # Exercise the batch-padding / masked-BN path (B not a multiple of 16).
    x5 = x[:5]
    out5 = jax.block_until_ready(base_model_forward(x5, prepared))
    ref5 = reference_forward(x5, params)
    assert out5.shape == (5, num_outputs)
    assert jnp.allclose(out5, ref5, atol=1e-3, rtol=1e-3), "mismatch (masked path)"

    print("KERNEL_OK")
</pallas_src>

<mosaic_0001>
module attributes {stable_mosaic.version = 11 : i64} {
  func.func @base_model_kernel(%arg0: memref<16x1024xf32, #tpu.memory_space<vmem>>, %arg1: memref<1024x128xbf16, #tpu.memory_space<vmem>>, %arg2: memref<128x128xbf16, #tpu.memory_space<vmem>>, %arg3: memref<128x128xbf16, #tpu.memory_space<vmem>>, %arg4: memref<8x128xf32, #tpu.memory_space<vmem>>, %arg5: memref<16x128xf32, #tpu.memory_space<vmem>>) attributes {dimension_semantics = [], scalar_prefetch = 0 : i64, scratch_operands = 0 : i64, tpu.core_type = #tpu.core_type<tc>} {
    %0 = tpu.iota {dimensions = array<i32: 0>} : vector<16x1xi32>
    %c8_i32 = arith.constant 8 : i32
    %1 = vector.broadcast %c8_i32 : i32 to vector<16x1xi32>
    %2 = arith.cmpi slt, %0, %1 : vector<16x1xi32>
    %3 = arith.extui %2 : vector<16x1xi1> to vector<16x1xi32>
    %4 = arith.sitofp %3 : vector<16x1xi32> to vector<16x1xf32>
    %c0 = arith.constant 0 : index
    %c0_0 = arith.constant 0 : index
    %5 = vector.load %arg4[%c0, %c0_0] : memref<8x128xf32, #tpu.memory_space<vmem>>, vector<8x128xf32>
    %6 = vector.extract_strided_slice %5 {offsets = [0, 0], sizes = [1, 128], strides = [1, 1]} : vector<8x128xf32> to vector<1x128xf32>
    %7 = vector.extract_strided_slice %5 {offsets = [1, 0], sizes = [1, 128], strides = [1, 1]} : vector<8x128xf32> to vector<1x128xf32>
    %8 = vector.extract_strided_slice %5 {offsets = [2, 0], sizes = [1, 128], strides = [1, 1]} : vector<8x128xf32> to vector<1x128xf32>
    %9 = vector.extract_strided_slice %5 {offsets = [3, 0], sizes = [1, 128], strides = [1, 1]} : vector<8x128xf32> to vector<1x128xf32>
    %10 = vector.extract_strided_slice %5 {offsets = [4, 0], sizes = [1, 128], strides = [1, 1]} : vector<8x128xf32> to vector<1x128xf32>
    %11 = vector.extract_strided_slice %5 {offsets = [5, 0], sizes = [1, 128], strides = [1, 1]} : vector<8x128xf32> to vector<1x128xf32>
    %12 = vector.extract_strided_slice %5 {offsets = [6, 0], sizes = [1, 128], strides = [1, 1]} : vector<8x128xf32> to vector<1x128xf32>
    %c0_1 = arith.constant 0 : index
    %c0_2 = arith.constant 0 : index
    %13 = vector.load %arg0[%c0_1, %c0_2] : memref<16x1024xf32, #tpu.memory_space<vmem>>, vector<16x1024xf32>
    %c0_3 = arith.constant 0 : index
    %c0_4 = arith.constant 0 : index
    %14 = vector.load %arg1[%c0_3, %c0_4] : memref<1024x128xbf16, #tpu.memory_space<vmem>>, vector<1024x128xbf16>
    %15 = arith.truncf %13 : vector<16x1024xf32> to vector<16x1024xbf16>
    %cst = arith.constant dense<0.000000e+00> : vector<16x128xf32>
    %16 = tpu.matmul %15, %14, %cst {dimension_numbers = #tpu.dot_dimension_numbers<[1], [0], [0], [1], [0, 0, 1, 1], [], []>} : vector<16x1024xbf16>, vector<1024x128xbf16>, vector<16x128xf32> -> vector<16x128xf32>
    %17 = vector.broadcast %6 : vector<1x128xf32> to vector<16x128xf32>
    %18 = arith.addf %16, %17 : vector<16x128xf32>
    %cst_5 = arith.constant 0.000000e+00 : f32
    %19 = vector.broadcast %cst_5 : f32 to vector<16x128xf32>
    %20 = arith.maximumf %18, %19 : vector<16x128xf32>
    %21 = vector.broadcast %4 : vector<16x1xf32> to vector<16x128xf32>
    %22 = arith.mulf %20, %21 : vector<16x128xf32>
    %cst_6 = arith.constant dense<0.000000e+00> : vector<128xf32>
    %23 = vector.multi_reduction <add>, %22, %cst_6 [0] : vector<16x128xf32> to vector<128xf32>
    %24 = vector.shape_cast %23 : vector<128xf32> to vector<1x128xf32>
    %25 = arith.mulf %22, %22 : vector<16x128xf32>
    %cst_7 = arith.constant dense<0.000000e+00> : vector<128xf32>
    %26 = vector.multi_reduction <add>, %25, %cst_7 [0] : vector<16x128xf32> to vector<128xf32>
    %27 = vector.shape_cast %26 : vector<128xf32> to vector<1x128xf32>
    %cst_8 = arith.constant 1.250000e-01 : f32
    %28 = vector.broadcast %cst_8 : f32 to vector<1x128xf32>
    %29 = arith.mulf %24, %28 : vector<1x128xf32>
    %cst_9 = arith.constant 1.250000e-01 : f32
    %30 = vector.broadcast %cst_9 : f32 to vector<1x128xf32>
    %31 = arith.mulf %27, %30 : vector<1x128xf32>
    %32 = arith.mulf %29, %29 : vector<1x128xf32>
    %33 = arith.subf %31, %32 : vector<1x128xf32>
    %cst_10 = arith.constant 0.000000e+00 : f32
    %34 = vector.broadcast %cst_10 : f32 to vector<1x128xf32>
    %35 = arith.maximumf %33, %34 : vector<1x128xf32>
    %cst_11 = arith.constant 9.99999974E-6 : f32
    %36 = vector.broadcast %cst_11 : f32 to vector<1x128xf32>
    %37 = arith.addf %35, %36 : vector<1x128xf32>
    %38 = math.rsqrt %37 : vector<1x128xf32>
    %39 = arith.mulf %7, %38 : vector<1x128xf32>
    %40 = arith.mulf %29, %39 : vector<1x128xf32>
    %41 = arith.subf %8, %40 : vector<1x128xf32>
    %42 = vector.broadcast %39 : vector<1x128xf32> to vector<16x128xf32>
    %43 = arith.mulf %20, %42 : vector<16x128xf32>
    %44 = vector.broadcast %41 : vector<1x128xf32> to vector<16x128xf32>
    %45 = arith.addf %43, %44 : vector<16x128xf32>
    %c0_12 = arith.constant 0 : index
    %c0_13 = arith.constant 0 : index
    %46 = vector.load %arg2[%c0_12, %c0_13] : memref<128x128xbf16, #tpu.memory_space<vmem>>, vector<128x128xbf16>
    %47 = arith.truncf %45 : vector<16x128xf32> to vector<16x128xbf16>
    %cst_14 = arith.constant dense<0.000000e+00> : vector<16x128xf32>
    %48 = tpu.matmul %47, %46, %cst_14 {dimension_numbers = #tpu.dot_dimension_numbers<[1], [0], [0], [1], [0, 0, 1, 1], [], []>} : vector<16x128xbf16>, vector<128x128xbf16>, vector<16x128xf32> -> vector<16x128xf32>
    %49 = vector.broadcast %9 : vector<1x128xf32> to vector<16x128xf32>
    %50 = arith.addf %48, %49 : vector<16x128xf32>
    %cst_15 = arith.constant 0.000000e+00 : f32
    %51 = vector.broadcast %cst_15 : f32 to vector<16x128xf32>
    %52 = arith.maximumf %50, %51 : vector<16x128xf32>
    %53 = vector.broadcast %4 : vector<16x1xf32> to vector<16x128xf32>
    %54 = arith.mulf %52, %53 : vector<16x128xf32>
    %cst_16 = arith.constant dense<0.000000e+00> : vector<128xf32>
    %55 = vector.multi_reduction <add>, %54, %cst_16 [0] : vector<16x128xf32> to vector<128xf32>
    %56 = vector.shape_cast %55 : vector<128xf32> to vector<1x128xf32>
    %57 = arith.mulf %54, %54 : vector<16x128xf32>
    %cst_17 = arith.constant dense<0.000000e+00> : vector<128xf32>
    %58 = vector.multi_reduction <add>, %57, %cst_17 [0] : vector<16x128xf32> to vector<128xf32>
    %59 = vector.shape_cast %58 : vector<128xf32> to vector<1x128xf32>
    %cst_18 = arith.constant 1.250000e-01 : f32
    %60 = vector.broadcast %cst_18 : f32 to vector<1x128xf32>
    %61 = arith.mulf %56, %60 : vector<1x128xf32>
    %cst_19 = arith.constant 1.250000e-01 : f32
    %62 = vector.broadcast %cst_19 : f32 to vector<1x128xf32>
    %63 = arith.mulf %59, %62 : vector<1x128xf32>
    %64 = arith.mulf %61, %61 : vector<1x128xf32>
    %65 = arith.subf %63, %64 : vector<1x128xf32>
    %cst_20 = arith.constant 0.000000e+00 : f32
    %66 = vector.broadcast %cst_20 : f32 to vector<1x128xf32>
    %67 = arith.maximumf %65, %66 : vector<1x128xf32>
    %cst_21 = arith.constant 9.99999974E-6 : f32
    %68 = vector.broadcast %cst_21 : f32 to vector<1x128xf32>
    %69 = arith.addf %67, %68 : vector<1x128xf32>
    %70 = math.rsqrt %69 : vector<1x128xf32>
    %71 = arith.mulf %10, %70 : vector<1x128xf32>
    %72 = arith.mulf %61, %71 : vector<1x128xf32>
    %73 = arith.subf %11, %72 : vector<1x128xf32>
    %74 = vector.broadcast %71 : vector<1x128xf32> to vector<16x128xf32>
    %75 = arith.mulf %52, %74 : vector<16x128xf32>
    %76 = vector.broadcast %73 : vector<1x128xf32> to vector<16x128xf32>
    %77 = arith.addf %75, %76 : vector<16x128xf32>
    %c0_22 = arith.constant 0 : index
    %c0_23 = arith.constant 0 : index
    %78 = vector.load %arg3[%c0_22, %c0_23] : memref<128x128xbf16, #tpu.memory_space<vmem>>, vector<128x128xbf16>
    %79 = arith.truncf %77 : vector<16x128xf32> to vector<16x128xbf16>
    %cst_24 = arith.constant dense<0.000000e+00> : vector<16x128xf32>
    %80 = tpu.matmul %79, %78, %cst_24 {dimension_numbers = #tpu.dot_dimension_numbers<[1], [0], [0], [1], [0, 0, 1, 1], [], []>} : vector<16x128xbf16>, vector<128x128xbf16>, vector<16x128xf32> -> vector<16x128xf32>
    %81 = vector.broadcast %12 : vector<1x128xf32> to vector<16x128xf32>
    %82 = arith.addf %80, %81 : vector<16x128xf32>
    %c0_25 = arith.constant 0 : index
    %c0_26 = arith.constant 0 : index
    %83 = vector.load %arg5[%c0_25, %c0_26] : memref<16x128xf32, #tpu.memory_space<vmem>>, vector<16x128xf32>
    tpu.vector_store %arg5[%c0_25, %c0_26], %82 {strides = array<i32>} : memref<16x128xf32, #tpu.memory_space<vmem>>, vector<16x128xf32>,
    return
  }
}

</mosaic_0001>

<bundles_post_ra>
// kernel: tpu_custom_call.1
= control target key start
LH: loop header
LB: loop body
LE: loop exit
PB: predicated region body
PF: predicated region fallthrough
CT: control target
= control target key end

     0   :  { %10 = vsyncpa [#allocation3], 0  ;;  %s1691_s0 = inlined_call_operand.hbm [shape: f32[16,1024], index: 0, kind: input, shape index: {}]   ;;  %s1692_s1 = inlined_call_operand.hbm [shape: bf16[1024,128], index: 1, kind: input, shape index: {}]   ;;  %s1693_s2 = inlined_call_operand.hbm [shape: bf16[128,128], index: 2, kind: input, shape index: {}]   ;;  %s1694_s3 = inlined_call_operand.hbm [shape: bf16[128,128], index: 3, kind: input, shape index: {}]   ;;  %s1695_s4 = inlined_call_operand.hbm [shape: f32[8,128], index: 4, kind: input, shape index: {}]   ;;  %s1696_s5 = inlined_call_operand.hbm [shape: f32[16,128], index: 5, kind: output, shape index: {}]  }
   0x1   :  { %11 = vsyncpa [#allocation6], 0 }
   0x2   :  { %12 = vsyncpa [#allocation9], 0 }
   0x3   :  { %13 = vsyncpa [#allocation4], 0  ;;  %s1584_s18 = smov [#allocation5]  }
   0x4   :  { %s31_s19 = sshll.u32 %s1584_s18, 4  ;;  %s32_s19 = int_to_ptr.vmem [resolvable:$true] %s31_s19 }
   0x5   :  { %s1464_s20 = scalar_lea.vmem %s32_s19, 8192  ;;  %p1469_p1 = scmp.lt.s32.totalorder %s32_s19, %s32_s19 }
   0x6   :  { %p1465_p0 = scmp.ne.s32.totalorder %s32_s19, %s1464_s20  ;;  %p1470_p2 = scmp.lt.s32.totalorder %s1464_s20, %s1464_s20 }
   0x8   :  { %p1471_p3 = por %p1470_p2, %p1469_p1 }
   0xa   :  { %p1472_p4 = pnand %p1471_p3, %p1465_p0 }
   0xc   :  { %1475 = shalt.err (!%p1472_p4)
}
   0xd   :  { %s1585_s21 = smov 64   ;;  %s1586_s22 = smov 4  }
   0xe   :  { %37 = dma.hbm_to_vmem [thread:$0]  %s1692_s1, 8192, %s32_s19, [#allocation6], %s1585_s21, %s1585_s21, %s1586_s22  }
   0xf   :  { %s1587_s25 = smov [#allocation8]   ;;  %s1588_s27 = smov [#allocation2]  }
  0x10   :  { %s55_s26 = sshll.u32 %s1587_s25, 4  ;;  %s19_s28 = sshll.u32 %s1588_s27, 4  ;;  %s56_s26 = int_to_ptr.vmem [resolvable:$true] %s55_s26  ;;  %s20_s28 = int_to_ptr.vmem [resolvable:$true] %s19_s28 }
  0x11   :  { %s1484_s29 = scalar_lea.vmem %s56_s26, 1024  ;;  %p1489_p6 = scmp.lt.s32.totalorder %s56_s26, %s56_s26 }
  0x12   :  { %p1485_p5 = scmp.ne.s32.totalorder %s56_s26, %s1484_s29  ;;  %p1490_p7 = scmp.lt.s32.totalorder %s1484_s29, %s1484_s29 }
  0x14   :  { %p1491_p8 = por %p1490_p7, %p1489_p6 }
  0x16   :  { %p1492_p9 = pnand %p1491_p8, %p1485_p5 }
  0x18   :  { %1495 = shalt.err (!%p1492_p9)
}
  0x19   :  { %61 = dma.hbm_to_vmem [thread:$0]  %s1694_s3, 1024, %s56_s26, [#allocation9], %s1585_s21, %s1585_s21, %s1586_s22  }
  0x1a   :  { %s1504_s1 = scalar_lea.vmem %s20_s28, 2048  ;;  %p1509_p11 = scmp.lt.s32.totalorder %s20_s28, %s20_s28 }
  0x1b   :  { %p1505_p10 = scmp.ne.s32.totalorder %s20_s28, %s1504_s1  ;;  %p1510_p12 = scmp.lt.s32.totalorder %s1504_s1, %s1504_s1 }
  0x1d   :  { %p1511_p13 = por %p1510_p12, %p1509_p11 }
  0x1f   :  { %p1512_p0 = pnand %p1511_p13, %p1505_p10 }
  0x21   :  { %1515 = shalt.err (!%p1512_p0)
}
  0x22   :  { %s1589_s7 = smov 1024   ;;  %s1590_s10 = smov [#allocation7]  }
  0x23   :  { %25 = dma.hbm_to_vmem [thread:$0]  %s1691_s0, 2048, %s20_s28, [#allocation3], %s1589_s7, %s1589_s7, %s1585_s21  }
  0x24   :  { %s43_s11 = sshll.u32 %s1590_s10, 4  ;;  %s1591_s12 = smov [#allocation10]   ;;  %s44_s11 = int_to_ptr.vmem [resolvable:$true] %s43_s11 }
  0x25   :  { %s68_s13 = sshll.u32 %s1591_s12, 4  ;;  %s1524_s3 = scalar_lea.vmem %s44_s11, 1024  ;;  %s69_s13 = int_to_ptr.vmem [resolvable:$true] %s68_s13 }
  0x26   :  { %p1525_p1 = scmp.ne.s32.totalorder %s44_s11, %s1524_s3  ;;  %p1529_p2 = scmp.lt.s32.totalorder %s44_s11, %s44_s11 }
  0x27   :  { %p1530_p3 = scmp.lt.s32.totalorder %s1524_s3, %s1524_s3 }
  0x29   :  { %p1531_p4 = por %p1530_p3, %p1529_p2 }
  0x2b   :  { %p1532_p5 = pnand %p1531_p4, %p1525_p1 }
  0x2d   :  { %1535 = shalt.err (!%p1532_p5)
}
  0x2e   :  { %49 = dma.hbm_to_vmem [thread:$0]  %s1693_s2, 1024, %s44_s11, [#allocation6], %s1585_s21, %s1585_s21, %s1586_s22  }
  0x2f   :  { %s1544_s0 = scalar_lea.vmem %s69_s13, 128  ;;  %p1549_p7 = scmp.lt.s32.totalorder %s69_s13, %s69_s13 }
  0x30   :  { %p1545_p6 = scmp.ne.s32.totalorder %s69_s13, %s1544_s0  ;;  %p1550_p8 = scmp.lt.s32.totalorder %s1544_s0, %s1544_s0 }
  0x32   :  { %p1551_p9 = por %p1550_p8, %p1549_p7 }
  0x34   :  { %p1552_p10 = pnand %p1551_p9, %p1545_p6 }
  0x36   :  { %1555 = shalt.err (!%p1552_p10)
}
  0x37   :  { %71 = dma.hbm_to_vmem [thread:$0]  %s1695_s4, 128, %s69_s13, [#allocation9]  }
  0x38   :  { %1576 = dma.done.wait [#allocation3], 2048  }
  0x39   :  { %1577 = vsyncadd [#allocation3], 4294965248 }
  0x3a   :  { %1578 = dma.done.wait [#allocation6], 9216  }
  0x3b   :  { %1579 = vsyncadd [#allocation6], 4294958080 }
  0x3c   :  { %1580 = dma.done.wait [#allocation9], 1152  }
  0x3d   :  { %1581 = vsyncadd [#allocation9], 4294966144  ;;  %v1372_v0 = vld [vmem:[#allocation5 + $0x78] sm:$0xff]   ;;  %v1376_v4 = vld [vmem:[#allocation5 + $0x70] sm:$0xff]   ;;  %vm1593_vm0 = vmmov 0   ;;  %s1594_s2 = smov [#allocation11]  }
  0x3e   :  { %v1373_v1 = vld [vmem:[#allocation5 + $0xf8] sm:$0xff]   ;;  %1213 = vmatprep.subr.bf16.mxu0 %v1372_v0  ;;  %v1377_v5 = vld [vmem:[#allocation5 + $0xf0] sm:$0xff]   ;;  %v1380_v8 = vld [vmem:[#allocation5 + $0x68] sm:$0xff]   ;;  %s1119_s4 = sshll.u32 %s1594_s2, 4  ;;  %s1120_s4 = int_to_ptr.vmem [resolvable:$true] %s1119_s4 }
  0x3f   :  { %v1374_v2 = vld [vmem:[#allocation5 + $0x38] sm:$0xff]   ;;  %1235 = vmatprep.subr.bf16.mxu1 %v1373_v1  ;;  %v1378_v6 = vld [vmem:[#allocation5 + $0x30] sm:$0xff]   ;;  %v1381_v9 = vld [vmem:[#allocation5 + $0xe8] sm:$0xff]   ;;  %s1556_s18 = scalar_lea.vmem %s1120_s4, 256  ;;  %p1561_p12 = scmp.lt.s32.totalorder %s1120_s4, %s1120_s4 }
  0x40   :  { %v1375_v3 = vld [vmem:[#allocation5 + $0xb8] sm:$0xff]   ;;  %1214 = vmatpush3.bf16.msra.mxu0 %v1374_v2  ;;  %v1379_v7 = vld [vmem:[#allocation5 + $0xb0] sm:$0xff]   ;;  %v1382_v10 = vld [vmem:[#allocation5 + $0x28] sm:$0xff]   ;;  %p1557_p11 = scmp.ne.s32.totalorder %s1120_s4, %s1556_s18  ;;  %p1562_p13 = scmp.lt.s32.totalorder %s1556_s18, %s1556_s18 }
  0x41   :  { %1236 = vmatpush3.bf16.msra.mxu1 %v1375_v3  ;;  %1215 = vmatprep.subr.bf16.mxu0 %v1376_v4  ;;  %v1383_v11 = vld [vmem:[#allocation5 + $0xa8] sm:$0xff]   ;;  %v1384_v12 = vld [vmem:[#allocation5 + $0x60] sm:$0xff]   ;;  %v1388_v16 = vld [vmem:[#allocation5 + $0x58] sm:$0xff]  }
  0x42   :  { %1237 = vmatprep.subr.bf16.mxu1 %v1377_v5  ;;  %v1385_v13 = vld [vmem:[#allocation5 + $0xe0] sm:$0xff]   ;;  %v1389_v17 = vld [vmem:[#allocation5 + $0xd8] sm:$0xff]   ;;  %v1392_v20 = vld [vmem:[#allocation5 + $0x50] sm:$0xff]   ;;  %p1563_p0 = por %p1562_p13, %p1561_p12 }
  0x43   :  { %v1386_v14 = vld [vmem:[#allocation5 + $0x20] sm:$0xff]   ;;  %v1390_v18 = vld [vmem:[#allocation5 + $0x18] sm:$0xff]   ;;  %v1393_v21 = vld [vmem:[#allocation5 + $0xd0] sm:$0xff]  }
  0x44   :  { %1216 = vmatpush3.bf16.msra.mxu0 %v1378_v6  ;;  %v1387_v15 = vld [vmem:[#allocation5 + $0xa0] sm:$0xff]   ;;  %v1391_v19 = vld [vmem:[#allocation5 + $0x98] sm:$0xff]   ;;  %v1394_v22 = vld [vmem:[#allocation5 + $0x10] sm:$0xff]   ;;  %p1564_p1 = pnand %p1563_p0, %p1557_p11 }
  0x45   :  { %1238 = vmatpush3.bf16.msra.mxu1 %v1379_v7  ;;  %1217 = vmatprep.subr.bf16.mxu0 %v1380_v8  ;;  %v1395_v23 = vld [vmem:[#allocation5 + $0x90] sm:$0xff]   ;;  %v1396_v24 = vld [vmem:[#allocation5 + $0x48] sm:$0xff]   ;;  %v1400_v28 = vld [vmem:[#allocation5 + $0x40] sm:$0xff]  }
  0x46   :  { %1239 = vmatprep.subr.bf16.mxu1 %v1381_v9  ;;  %v1397_v25 = vld [vmem:[#allocation5 + $0xc8] sm:$0xff]   ;;  %v1401_v29 = vld [vmem:[#allocation5 + $0xc0] sm:$0xff]   ;;  %v101_v34 = vld [vmem:[#allocation2 + $0x18] sm:$0xff] }
  0x47   :  { %v1398_v26 = vld [vmem:[#allocation5 + $0x8] sm:$0xff]   ;;  %v1402_v30 = vld [vmem:[#allocation5] sm:$0xff]   ;;  %v109_v36 = vld [vmem:[#allocation2 + $0x58] sm:$0xff] }
  0x48   :  { %1218 = vmatpush3.bf16.msra.mxu0 %v1382_v10  ;;  %v1399_v27 = vld [vmem:[#allocation5 + $0x88] sm:$0xff]   ;;  %v1403_v31 = vld [vmem:[#allocation5 + $0x80] sm:$0xff]   ;;  %v245_v39 = vpack.c.bf16 %v109_v36, %v101_v34  ;;  %v100_v41 = vld [vmem:[#allocation2 + $0x10] sm:$0xff] }
  0x49   :  { %1240 = vmatpush3.bf16.msra.mxu1 %v1383_v11  ;;  %1219 = vmatprep.subr.bf16.mxu0 %v1384_v12  ;;  %v99_v32 = vld [vmem:[#allocation2 + $0x8] sm:$0xff]  ;;  %v98_v37 = vld [vmem:[#allocation2] sm:$0xff]  ;;  %v108_v42 = vld [vmem:[#allocation2 + $0x50] sm:$0xff] }
  0x4a   :  { %1241 = vmatprep.subr.bf16.mxu1 %v1385_v13  ;;  %v107_v33 = vld [vmem:[#allocation2 + $0x48] sm:$0xff]  ;;  %v106_v38 = vld [vmem:[#allocation2 + $0x40] sm:$0xff]  ;;  %v244_v43 = vpack.c.bf16 %v108_v42, %v100_v41  ;;  %v1404_v44 = vld [vmem:[#allocation5 + $0x178] sm:$0xff]   ;;  %711 = vmatprep.mubr.bf16.mxu1 %v245_v39 }
  0x4b   :  { %v243_v35 = vpack.c.bf16 %v107_v33, %v99_v32  ;;  %v242_v40 = vpack.c.bf16 %v106_v38, %v98_v37  ;;  %v1405_v45 = vld [vmem:[#allocation5 + $0x1f8] sm:$0xff]   ;;  %v1408_v48 = vld [vmem:[#allocation5 + $0x170] sm:$0xff]   ;;  %v1412_v52 = vld [vmem:[#allocation5 + $0x168] sm:$0xff]   ;;  %v250_v33 = vlaneseq }
  0x4c   :  { %1220 = vmatpush3.bf16.msra.mxu0 %v1386_v14  ;;  %v1406_v46 = vld [vmem:[#allocation5 + $0x138] sm:$0xff]   ;;  %v1409_v49 = vld [vmem:[#allocation5 + $0x1f0] sm:$0xff]   ;;  %v1413_v53 = vld [vmem:[#allocation5 + $0x1e8] sm:$0xff]  }
  0x4d   :  { %1242 = vmatpush3.bf16.msra.mxu1 %v1387_v15  ;;  %1221 = vmatprep.subr.bf16.mxu0 %v1388_v16  ;;  %v1407_v47 = vld [vmem:[#allocation5 + $0x1b8] sm:$0xff]   ;;  %v1410_v50 = vld [vmem:[#allocation5 + $0x130] sm:$0xff]   ;;  %v1414_v54 = vld [vmem:[#allocation5 + $0x128] sm:$0xff]   ;;  %v1663_v36 = vshrl.u32 %v250_v33, 7 }
  0x4e   :  { %1243 = vmatprep.subr.bf16.mxu1 %v1389_v17  ;;  %670 = vmatprep.mubr.bf16.mxu0 %v243_v35  ;;  %v1411_v51 = vld [vmem:[#allocation5 + $0x1b0] sm:$0xff]   ;;  %v1415_v55 = vld [vmem:[#allocation5 + $0x1a8] sm:$0xff]   ;;  %v1416_v56 = vld [vmem:[#allocation5 + $0x160] sm:$0xff]  }
  0x4f   :  { %v1417_v57 = vld [vmem:[#allocation5 + $0x1e0] sm:$0xff]   ;;  %v1420_v60 = vld [vmem:[#allocation5 + $0x158] sm:$0xff]   ;;  %v1424_v0 = vld [vmem:[#allocation5 + $0x150] sm:$0xff]   ;;  %v252_v38 = vsub.s32 0, %v1663_v36 }
  0x50   :  { %1222 = vmatpush3.bf16.msra.mxu0 %v1390_v18  ;;  %v1418_v58 = vld [vmem:[#allocation5 + $0x120] sm:$0xff]   ;;  %v1421_v61 = vld [vmem:[#allocation5 + $0x1d8] sm:$0xff]   ;;  %v1425_v1 = vld [vmem:[#allocation5 + $0x1d0] sm:$0xff]  }
  0x51   :  { %1244 = vmatpush3.bf16.msra.mxu1 %v1391_v19  ;;  %1223 = vmatprep.subr.bf16.mxu0 %v1392_v20  ;;  %v1419_v59 = vld [vmem:[#allocation5 + $0x1a0] sm:$0xff]   ;;  %v1422_v62 = vld [vmem:[#allocation5 + $0x118] sm:$0xff]   ;;  %v1426_v2 = vld [vmem:[#allocation5 + $0x110] sm:$0xff]  }
  0x52   :  { %1245 = vmatprep.subr.bf16.mxu1 %v1393_v21  ;;  %v1423_v63 = vld [vmem:[#allocation5 + $0x198] sm:$0xff]   ;;  %v1427_v3 = vld [vmem:[#allocation5 + $0x190] sm:$0xff]   ;;  %v1428_v4 = vld [vmem:[#allocation5 + $0x148] sm:$0xff]  }
  0x53   :  { %v1429_v5 = vld [vmem:[#allocation5 + $0x1c8] sm:$0xff]   ;;  %v1432_v8 = vld [vmem:[#allocation5 + $0x140] sm:$0xff]   ;;  %v105_v14 = vld [vmem:[#allocation2 + $0x38] sm:$0xff] }
  0x54   :  { %1224 = vmatpush3.bf16.msra.mxu0 %v1394_v22  ;;  %v1430_v6 = vld [vmem:[#allocation5 + $0x108] sm:$0xff]   ;;  %v1433_v9 = vld [vmem:[#allocation5 + $0x1c0] sm:$0xff]   ;;  %v113_v15 = vld [vmem:[#allocation2 + $0x78] sm:$0xff] }
  0x55   :  { %1246 = vmatpush3.bf16.msra.mxu1 %v1395_v23  ;;  %1225 = vmatprep.subr.bf16.mxu0 %v1396_v24  ;;  %v1431_v7 = vld [vmem:[#allocation5 + $0x188] sm:$0xff]   ;;  %v1434_v10 = vld [vmem:[#allocation5 + $0x100] sm:$0xff]   ;;  %v249_v17 = vpack.c.bf16 %v113_v15, %v105_v14  ;;  %v104_v20 = vld [vmem:[#allocation2 + $0x30] sm:$0xff] }
  0x56   :  { %1247 = vmatprep.subr.bf16.mxu1 %v1397_v25  ;;  %v1435_v11 = vld [vmem:[#allocation5 + $0x180] sm:$0xff]   ;;  %v103_v12 = vld [vmem:[#allocation2 + $0x28] sm:$0xff]  ;;  %v112_v22 = vld [vmem:[#allocation2 + $0x70] sm:$0xff]  ;;  %v1592_v25 = vmov 0.0  }
  0x57   :  { %v111_v13 = vld [vmem:[#allocation2 + $0x68] sm:$0xff]  ;;  %v102_v18 = vld [vmem:[#allocation2 + $0x20] sm:$0xff]  ;;  %v248_v23 = vpack.c.bf16 %v112_v22, %v104_v20  ;;  %v1436_v24 = vld [vmem:[#allocation7 + $0x38] sm:$0xff]  }
  0x58   :  { %1226 = vmatpush3.bf16.msra.mxu0 %v1398_v26  ;;  %v247_v16 = vpack.c.bf16 %v111_v13, %v103_v12  ;;  %v110_v19 = vld [vmem:[#allocation2 + $0x60] sm:$0xff]  ;;  %v1437_v26 = vld [vmem:[#allocation7 + $0x30] sm:$0xff]  }
  0x59   :  { %1248 = vmatpush3.bf16.msra.mxu1 %v1399_v27  ;;  %1227 = vmatprep.subr.bf16.mxu0 %v1400_v28  ;;  %v246_v21 = vpack.c.bf16 %v110_v19, %v102_v18  ;;  %v1438_v27 = vld [vmem:[#allocation7 + $0x28] sm:$0xff]   ;;  %v1439_v28 = vld [vmem:[#allocation7 + $0x20] sm:$0xff]  }
  0x5a   :  { %1249 = vmatprep.subr.bf16.mxu1 %v1401_v29  ;;  %v1440_v29 = vld [vmem:[#allocation7 + $0x18] sm:$0xff]   ;;  %v1443_v32 = vld [vmem:[#allocation7] sm:$0xff]  }
  0x5c   :  { %1228 = vmatpush3.bf16.msra.mxu0 %v1402_v30  ;;  %v1441_v30 = vld [vmem:[#allocation7 + $0x10] sm:$0xff]  }
  0x5d   :  { %1250 = vmatpush3.bf16.msra.mxu1 %v1403_v31  ;;  %1257 = vmatprep.subr.bf16.mxu0 %v1404_v44  ;;  %v1442_v31 = vld [vmem:[#allocation7 + $0x8] sm:$0xff]  }
  0x5e   :  { %1279 = vmatprep.subr.bf16.mxu1 %v1405_v45 }
  0x5f   :  { %671 = vmatmul.mubr.bf16.vlgmr.msra.gmra.mxu0 %v242_v40  ;;  %v1666_v40 = vld [vmem:[#allocation10] sm:$0xff] }
  0x60   :  { %712 = vmatmul.mubr.bf16.vlgmr.msra.gmra.mxu1 %v244_v43  ;;  %1258 = vmatpush3.bf16.msra.mxu0 %v1406_v46  ;;  %v253_v42 = vrot.slane %v1666_v40, %v252_v38 }
  0x61   :  { %1280 = vmatpush3.bf16.msra.mxu1 %v1407_v47  ;;  %1259 = vmatprep.subr.bf16.mxu0 %v1408_v48 }
  0x62   :  { %1281 = vmatprep.subr.bf16.mxu1 %v1409_v49  ;;  %752 = vmatprep.mubr.bf16.mxu0 %v247_v16 }
  0x63   :  { %793 = vmatprep.mubr.bf16.mxu1 %v249_v17 }
  0x64   :  { %1260 = vmatpush3.bf16.msra.mxu0 %v1410_v50 }
  0x65   :  { %1282 = vmatpush3.bf16.msra.mxu1 %v1411_v51  ;;  %1261 = vmatprep.subr.bf16.mxu0 %v1412_v52 }
  0x66   :  { %1283 = vmatprep.subr.bf16.mxu1 %v1413_v53 }
  0x68   :  { %1262 = vmatpush3.bf16.msra.mxu0 %v1414_v54 }
  0x69   :  { %1284 = vmatpush3.bf16.msra.mxu1 %v1415_v55  ;;  %1263 = vmatprep.subr.bf16.mxu0 %v1416_v56 }
  0x6a   :  { %1285 = vmatprep.subr.bf16.mxu1 %v1417_v57 }
  0x6c   :  { %1264 = vmatpush3.bf16.msra.mxu0 %v1418_v58 }
  0x6d   :  { %1286 = vmatpush3.bf16.msra.mxu1 %v1419_v59  ;;  %1265 = vmatprep.subr.bf16.mxu0 %v1420_v60 }
  0x6e   :  { %1287 = vmatprep.subr.bf16.mxu1 %v1421_v61 }
  0x70   :  { %1266 = vmatpush3.bf16.msra.mxu0 %v1422_v62 }
  0x71   :  { %1288 = vmatpush3.bf16.msra.mxu1 %v1423_v63  ;;  %1267 = vmatprep.subr.bf16.mxu0 %v1424_v0 }
  0x72   :  { %1289 = vmatprep.subr.bf16.mxu1 %v1425_v1 }
  0x74   :  { %1268 = vmatpush3.bf16.msra.mxu0 %v1426_v2 }
  0x75   :  { %1290 = vmatpush3.bf16.msra.mxu1 %v1427_v3  ;;  %1269 = vmatprep.subr.bf16.mxu0 %v1428_v4 }
  0x76   :  { %1291 = vmatprep.subr.bf16.mxu1 %v1429_v5 }
  0x78   :  { %1270 = vmatpush3.bf16.msra.mxu0 %v1430_v6 }
  0x79   :  { %1292 = vmatpush3.bf16.msra.mxu1 %v1431_v7  ;;  %1271 = vmatprep.subr.bf16.mxu0 %v1432_v8 }
  0x7a   :  { %1293 = vmatprep.subr.bf16.mxu1 %v1433_v9 }
  0x7c   :  { %1272 = vmatpush3.bf16.msra.mxu0 %v1434_v10 }
  0x7d   :  { %1294 = vmatpush3.bf16.msra.mxu1 %v1435_v11  ;;  %1319 = vmatprep.subr.bf16.mxu0 %v1592_v25 }
  0x7e   :  { %1339 = vmatprep.subr.bf16.mxu1 %v1592_v25 }
  0x7f   :  { %753 = vmatmul.mubr.bf16.vlgmr.msra.gmra.mxu0 %v246_v21 }
  0x80   :  { %794 = vmatmul.mubr.bf16.vlgmr.msra.gmra.mxu1 %v248_v23  ;;  %1320 = vmatpush3.bf16.msra.mxu0 %v1436_v24 }
  0x81   :  { %1321 = vmatprep.subr.bf16.mxu0 %v1592_v25  ;;  %1335 = vmatprep.mubr.msk.bf16.mxu0 %vm1593_vm0, %v1592_v25 }
  0x82   :  { %1355 = vmatprep.mubr.msk.bf16.mxu1 %vm1593_vm0, %v1592_v25 }
  0x84   :  { %1322 = vmatpush3.bf16.msra.mxu0 %v1437_v26 }
  0x85   :  { %1323 = vmatprep.subr.bf16.mxu0 %v1592_v25 }
  0x88   :  { %1324 = vmatpush3.bf16.msra.mxu0 %v1438_v27 }
  0x89   :  { %1325 = vmatprep.subr.bf16.mxu0 %v1592_v25 }
  0x8c   :  { %1326 = vmatpush3.bf16.msra.mxu0 %v1439_v28 }
  0x8d   :  { %1327 = vmatprep.subr.bf16.mxu0 %v1592_v25 }
  0x90   :  { %1328 = vmatpush3.bf16.msra.mxu0 %v1440_v29 }
  0x91   :  { %1329 = vmatprep.subr.bf16.mxu0 %v1592_v25 }
  0x94   :  { %1330 = vmatpush3.bf16.msra.mxu0 %v1441_v30 }
  0x95   :  { %1331 = vmatprep.subr.bf16.mxu0 %v1592_v25 }
  0x98   :  { %1332 = vmatpush3.bf16.msra.mxu0 %v1442_v31 }
  0x99   :  { %1333 = vmatprep.subr.bf16.mxu0 %v1592_v25 }
  0x9c   :  { %1334 = vmatpush3.bf16.msra.mxu0 %v1443_v32 }
 0x11f   :  { %v1229_v34 = vpop.f32.mrf.mxu0 }
 0x120   :  { %v1251_v35 = vpop.f32.mrf.mxu1 }
 0x121   :  { %v1230_v37 = vpop.f32.mrf.mxu0 }
 0x122   :  { %v1252_v39 = vpop.f32.mrf.mxu1  ;;  %v1231_v43 = vadd.f32 %v1230_v37, %v1229_v34  ;;  %v837_v34 = vsub.s32 1, %v1663_v36 }
 0x123   :  { %v1232_v41 = vpop.f32.mrf.mxu0  ;;  %v1253_v47 = vadd.f32 %v1252_v39, %v1251_v35  ;;  %v843_v39 = vsub.s32 2, %v1663_v36 }
 0x124   :  { %v1254_v44 = vpop.f32.mrf.mxu1  ;;  %v673_v46 = vadd.f32 %v1231_v43, %v253_v42 }
 0x125   :  { %v1233_v45 = vpop.f32.mrf.mxu0 }
 0x126   :  { %v1234_v48 = vadd.f32 %v1233_v45, %v1232_v41  ;;  %v1255_v49 = vpop.f32.mrf.mxu1  ;;  %v714_v53 = vadd.f32 %v1253_v47, %v673_v46 }
 0x127   :  { %v1256_v58 = vadd.f32 %v1255_v49, %v1254_v44  ;;  %v1445_v49 = vld [vmem:[#allocation8 + $0x30] sm:$0xff]  }
 0x128   :  { %v676_v54 = vadd.f32 %v1234_v48, %v253_v42  ;;  %v1444_v48 = vld [vmem:[#allocation8 + $0x38] sm:$0xff]  }
 0x129   :  { %1340 = vmatpush3.bf16.msra.mxu1 %v1444_v48 }
 0x12a   :  { %v717_v62 = vadd.f32 %v1256_v58, %v676_v54  ;;  %1341 = vmatprep.subr.bf16.mxu1 %v1592_v25  ;;  %v1450_v54 = vld [vmem:[#allocation8 + $0x8] sm:$0xff]  }
 0x12d   :  { %1342 = vmatpush3.bf16.msra.mxu1 %v1445_v49 }
 0x12e   :  { %1343 = vmatprep.subr.bf16.mxu1 %v1592_v25 }
 0x13f   :  { %v1273_v50 = vpop.f32.mrf.mxu0 }
 0x140   :  { %v1295_v51 = vpop.f32.mrf.mxu1 }
 0x141   :  { %v1274_v52 = vpop.f32.mrf.mxu0 }
 0x142   :  { %v1275_v55 = vadd.f32 %v1274_v52, %v1273_v50  ;;  %v1296_v56 = vpop.f32.mrf.mxu1  ;;  %v1446_v50 = vld [vmem:[#allocation8 + $0x28] sm:$0xff]   ;;  %v1448_v52 = vld [vmem:[#allocation8 + $0x18] sm:$0xff]  }
 0x143   :  { %v1276_v57 = vpop.f32.mrf.mxu0  ;;  %v1297_v63 = vadd.f32 %v1296_v56, %v1295_v51  ;;  %1344 = vmatpush3.bf16.msra.mxu1 %v1446_v50  ;;  %v1447_v51 = vld [vmem:[#allocation8 + $0x20] sm:$0xff]   ;;  %v866_v56 = vsub.s32 3, %v1663_v36 }
 0x144   :  { %v755_v59 = vadd.f32 %v1275_v55, %v714_v53  ;;  %v1298_v60 = vpop.f32.mrf.mxu1  ;;  %1345 = vmatprep.subr.bf16.mxu1 %v1592_v25  ;;  %v1449_v53 = vld [vmem:[#allocation8 + $0x10] sm:$0xff]   ;;  %v1451_v55 = vld [vmem:[#allocation8] sm:$0xff]  }
 0x145   :  { %v1277_v61 = vpop.f32.mrf.mxu0 }
 0x146   :  { %v1278_v0 = vadd.f32 %v1277_v61, %v1276_v57  ;;  %v1299_v1 = vpop.f32.mrf.mxu1  ;;  %v796_v2 = vadd.f32 %v1297_v63, %v755_v59  ;;  %v867_v57 = vrot.slane %v1666_v40, %v866_v56 }
 0x147   :  { %v1300_v4 = vadd.f32 %v1299_v1, %v1298_v60  ;;  %1346 = vmatpush3.bf16.msra.mxu1 %v1447_v51 }
 0x148   :  { %v758_v3 = vadd.f32 %v1278_v0, %v717_v62  ;;  %v802_v6 = vmax.f32 %v796_v2, 0.0  ;;  %1347 = vmatprep.subr.bf16.mxu1 %v1592_v25 }
 0x14a   :  { %v799_v5 = vadd.f32 %v1300_v4, %v758_v3  ;;  %v813_v9 = vmul.f32 %v802_v6, %v802_v6 }
 0x14b   :  { %1348 = vmatpush3.bf16.msra.mxu1 %v1448_v52 }
 0x14c   :  { %v803_v7 = vmax.f32 %v799_v5, 0.0  ;;  %1349 = vmatprep.subr.bf16.mxu1 %v1592_v25 }
 0x14e   :  { %v805_v8 = vmul.f32 0.0, %v803_v7 }
 0x14f   :  { %1350 = vmatpush3.bf16.msra.mxu1 %v1449_v53 }
 0x150   :  { %v806_v10 = vadd.f32 %v805_v8, %v802_v6  ;;  %v814_v11 = vmul.f32 %v805_v8, %v805_v8  ;;  %1351 = vmatprep.subr.bf16.mxu1 %v1592_v25 }
 0x152   :  { %v807_v12 = vrot.slane %v806_v10, 4  ;;  %v815_v13 = vadd.f32 %v814_v11, %v813_v9 }
 0x153   :  { %1352 = vmatpush3.bf16.msra.mxu1 %v1450_v54 }
 0x154   :  { %v808_v14 = vadd.f32 %v807_v12, %v806_v10  ;;  %v816_v15 = vrot.slane %v815_v13, 4  ;;  %1353 = vmatprep.subr.bf16.mxu1 %v1592_v25 }
 0x156   :  { %v809_v16 = vrot.slane %v808_v14, 2  ;;  %v817_v17 = vadd.f32 %v816_v15, %v815_v13 }
 0x157   :  { %1354 = vmatpush3.bf16.msra.mxu1 %v1451_v55 }
 0x158   :  { %v810_v18 = vadd.f32 %v809_v16, %v808_v14  ;;  %v818_v19 = vrot.slane %v817_v17, 2 }
 0x15a   :  { %v811_v20 = vrot.slane %v810_v18, 1  ;;  %v819_v21 = vadd.f32 %v818_v19, %v817_v17 }
 0x15c   :  { %v812_v22 = vadd.f32 %v811_v20, %v810_v18  ;;  %v820_v23 = vrot.slane %v819_v21, 1 }
 0x15e   :  { %v821_v24 = vadd.f32 %v820_v23, %v819_v21  ;;  %v822_v26 = vmul.f32 0.125, %v812_v22 }
 0x160   :  { %v823_v27 = vmul.f32 0.125, %v821_v24  ;;  %v824_v28 = vmul.f32 %v822_v26, %v822_v26 }
 0x162   :  { %v825_v29 = vsub.f32 %v823_v27, %v824_v28  ;;  %v992_v27 = vsub.s32 4, %v1663_v36 }
 0x164   :  { %v826_v30 = vmax.f32 %v825_v29, 0.0 }
 0x166   :  { %v827_v31 = vadd.f32 1e-05, %v826_v30 }
 0x168   :  { %1452 = vrsqrt.f32 %v827_v31  ;;  %v998_v31 = vsub.s32 5, %v1663_v36 }
 0x175   :  { %v1453_v32 = vpop.eup %1452 }
 0x176   :  { %v829_v33 = vmul.f32 %v1453_v32, %v1666_v40 }
 0x178   :  { %v830_v35 = vmul.f32 %v829_v33, %v822_v26  ;;  %v838_v38 = vrot.slane %v829_v33, %v837_v34 }
 0x17a   :  { %v832_v37 = vrot.slane %v830_v35, 7  ;;  %v839_v42 = vmul.f32 %v838_v38, %v802_v6  ;;  %v840_v43 = vmul.f32 %v838_v38, %v803_v7 }
 0x17c   :  { %v834_v41 = vsub.f32 %v1666_v40, %v832_v37 }
 0x17e   :  { %v844_v44 = vrot.slane %v834_v41, %v843_v39  ;;  %v1021_v41 = vsub.s32 6, %v1663_v36 }
 0x180   :  { %v846_v45 = vadd.f32 %v844_v44, %v840_v43  ;;  %v845_v46 = vadd.f32 %v844_v44, %v839_v42  ;;  %v1022_v42 = vrot.slane %v1666_v40, %v1021_v41 }
 0x182   :  { %v863_v47 = vpack.c.bf16 %v846_v45, %v845_v46 }
 0x184   :  { %1336 = vmatmul.mubr.bf16.vlgmr.msra.gmra.mxu0 %v863_v47 }
 0x244   :  { %v950_v58 = vpop.f32.mrf.mxu0 }
 0x245   :  { %v951_v60 = vadd.f32 %v950_v58, %v867_v57 }
 0x246   :  { %v1337_v59 = vpop.f32.mrf.mxu0 }
 0x247   :  { %v957_v0 = vmax.f32 %v951_v60, 0.0 }
 0x248   :  { %v953_v61 = vpop.f32.mrf.mxu0 }
 0x249   :  { %v954_v62 = vadd.f32 %v953_v61, %v867_v57  ;;  %v968_v3 = vmul.f32 %v957_v0, %v957_v0 }
 0x24a   :  { %v1338_v63 = vpop.f32.mrf.mxu0 }
 0x24b   :  { %v958_v1 = vmax.f32 %v954_v62, 0.0 }
 0x24d   :  { %v960_v2 = vmul.f32 0.0, %v958_v1 }
 0x24f   :  { %v961_v4 = vadd.f32 %v960_v2, %v957_v0  ;;  %v969_v5 = vmul.f32 %v960_v2, %v960_v2 }
 0x251   :  { %v962_v6 = vrot.slane %v961_v4, 4  ;;  %v970_v25 = vadd.f32 %v969_v5, %v968_v3 }
 0x253   :  { %v963_v7 = vadd.f32 %v962_v6, %v961_v4  ;;  %v971_v8 = vrot.slane %v970_v25, 4 }
 0x255   :  { %v964_v9 = vrot.slane %v963_v7, 2  ;;  %v972_v10 = vadd.f32 %v971_v8, %v970_v25 }
 0x257   :  { %v965_v11 = vadd.f32 %v964_v9, %v963_v7  ;;  %v973_v12 = vrot.slane %v972_v10, 2 }
 0x259   :  { %v966_v13 = vrot.slane %v965_v11, 1  ;;  %v974_v14 = vadd.f32 %v973_v12, %v972_v10 }
 0x25b   :  { %v967_v15 = vadd.f32 %v966_v13, %v965_v11  ;;  %v975_v16 = vrot.slane %v974_v14, 1 }
 0x25d   :  { %v976_v17 = vadd.f32 %v975_v16, %v974_v14  ;;  %v977_v18 = vmul.f32 0.125, %v967_v15 }
 0x25f   :  { %v978_v19 = vmul.f32 0.125, %v976_v17  ;;  %v979_v20 = vmul.f32 %v977_v18, %v977_v18 }
 0x261   :  { %v980_v21 = vsub.f32 %v978_v19, %v979_v20 }
 0x263   :  { %v981_v22 = vmax.f32 %v980_v21, 0.0 }
 0x265   :  { %v982_v23 = vadd.f32 1e-05, %v981_v22 }
 0x267   :  { %1454 = vrsqrt.f32 %v982_v23 }
 0x274   :  { %v1455_v24 = vpop.eup %1454 }
 0x275   :  { %v984_v26 = vmul.f32 %v1455_v24, %v1666_v40 }
 0x277   :  { %v985_v28 = vmul.f32 %v984_v26, %v977_v18  ;;  %v993_v30 = vrot.slane %v984_v26, %v992_v27 }
 0x279   :  { %v987_v29 = vrot.slane %v985_v28, 7  ;;  %v994_v33 = vmul.f32 %v993_v30, %v957_v0  ;;  %v995_v34 = vmul.f32 %v993_v30, %v958_v1 }
 0x27b   :  { %v989_v32 = vsub.f32 %v1666_v40, %v987_v29 }
 0x27d   :  { %v999_v35 = vrot.slane %v989_v32, %v998_v31 }
 0x27f   :  { %v1000_v37 = vadd.f32 %v999_v35, %v994_v33  ;;  %v1001_v38 = vadd.f32 %v999_v35, %v995_v34 }
 0x281   :  { %v1018_v39 = vpack.c.bf16 %v1001_v38, %v1000_v37 }
 0x283   :  { %1356 = vmatmul.mubr.bf16.vlgmr.msra.gmra.mxu1 %v1018_v39 }
 0x343   :  { %v1105_v43 = vpop.f32.mrf.mxu1 }
 0x344   :  { %v1106_v44 = vadd.f32 %v1105_v43, %v1022_v42 }
 0x345   :  { %v1357_v45 = vpop.f32.mrf.mxu1 }
 0x346   :  { %1112 = vst [vmem:[#allocation11] sm:$0xff] %v1106_v44 }
 0x347   :  { %v1108_v46 = vpop.f32.mrf.mxu1 }
 0x348   :  { %v1109_v47 = vadd.f32 %v1108_v46, %v1022_v42 }
 0x349   :  { %v1358_v48 = vpop.f32.mrf.mxu1 }
 0x34a   :  { %1113 = vst [vmem:[#allocation11 + $0x8] sm:$0xff] %v1109_v47 }
 0x34b   :  { %1567 = shalt.err (!%p1564_p1)
}
 0x34c   :  { %s1595_s19 = smov 128   ;;  %s1596_s20 = smov 8  }
 0x34d   :  { %1125 = dma.vmem_to_hbm [thread:$0]  %s1120_s4, 256, %s1696_s5, [#allocation4], %s1595_s19, %s1595_s19, %s1596_s20  }
 0x34e   :  { %1582 = dma.done.wait [#allocation4], 256  }
 0x34f   :  { %1583 = vsyncadd [#allocation4], 4294967040 }
 0x350   :  { %1129 = vsyncpa [#allocation3], 1 }
 0x351   :  { %1130 = vsyncpa [#allocation6], 1 }
 0x352   :  { %1131 = vsyncpa [#allocation9], 1 }
 0x353   :  { %1132 = vsyncpa [#allocation4], 1 }

</bundles_post_ra>
